<compile_context>
chip_gen: v6e
topology: v6e:2x2x1
jax: 0.10.0
libtpu: 0.0.40
codegen_flags: <defaults>
</compile_context>

<pallas_src>
import math
from functools import partial

import jax
import jax.numpy as jnp
from jax.experimental import pallas as pl
from jax.experimental.pallas import tpu as pltpu

NEG_INF = -1e30  # finite "minus infinity": masked probs underflow to exactly 0


# --------------------------------------------------------------------------
# Fused projection kernel: one wide (rows, D) x (D, H*dk) MXU matmul.
# --------------------------------------------------------------------------
def _proj_kernel(x_ref, w_ref, o_ref):
    o_ref[...] = jnp.dot(x_ref[...], w_ref[...],
                         preferred_element_type=jnp.float32).astype(o_ref.dtype)


def _pick_rows(m, target=256):
    if m <= target:
        return m
    for cand in range(target, 7, -8):
        if m % cand == 0:
            return cand
    return m


def _project(x2d, w, out_dtype):
    M, D = x2d.shape
    Dout = w.shape[1]
    rb = _pick_rows(M)
    return pl.pallas_call(
        _proj_kernel,
        out_shape=jax.ShapeDtypeStruct((M, Dout), out_dtype),
        grid=(M // rb,),
        in_specs=[pl.BlockSpec((rb, D), lambda i: (i, 0)),
                  pl.BlockSpec((D, Dout), lambda i: (0, 0))],
        out_specs=pl.BlockSpec((rb, Dout), lambda i: (i, 0)),
        compiler_params=pltpu.CompilerParams(dimension_semantics=("parallel",)),
    )(x2d, w)


# --------------------------------------------------------------------------
# Flash-style attention kernel (consumes already-projected Q/K/V).
# --------------------------------------------------------------------------
def mha_flash_kernel(qp_ref, kp_ref, vp_ref, mask_ref, wo_ref, bo_ref,
                     o_ref,
                     m_scr, l_scr, acc_scr,
                     *, num_heads, head_dim, is_causal, q_block, k_block):
    """Grid = (batch, q tiles, kv tiles); kv axis is the innermost reduction."""
    qi = pl.program_id(1)
    ki = pl.program_id(2)
    nk = pl.num_programs(2)
    cdt = qp_ref.dtype                     # compute dtype for MXU operands

    @pl.when(ki == 0)
    def _init():
        m_scr[...] = jnp.full_like(m_scr, NEG_INF)
        l_scr[...] = jnp.zeros_like(l_scr)
        acc_scr[...] = jnp.zeros_like(acc_scr)

    def _compute():
        # Already projected (and Q already scaled by 1/sqrt(dk) via Wq).
        qp = qp_ref[0]                     # (tq, H*dk) -- resident across kv loop
        kp = kp_ref[0]                     # (tk, H*dk)
        vp = vp_ref[0]                     # (tk, H*dk)

        # key-padding (+ causal) mask for this tile pair, shared by all heads
        mask = jnp.broadcast_to(mask_ref[0] != 0, (q_block, k_block))
        if is_causal:
            q_pos = qi * q_block + jax.lax.broadcasted_iota(
                jnp.int32, (q_block, k_block), 0)
            k_pos = ki * k_block + jax.lax.broadcasted_iota(
                jnp.int32, (q_block, k_block), 1)
            mask = jnp.logical_and(mask, q_pos >= k_pos)

        # H is small & static -> unrolled; per-head dk-contracted matmuls are
        # inherent to MHA (only the projections are head-fused).
        for h in range(num_heads):
            lo = h * head_dim
            qh = qp[:, lo:lo + head_dim]          # (tq, dk)
            kh = kp[:, lo:lo + head_dim]          # (tk, dk)
            vh = vp[:, lo:lo + head_dim]          # (tk, dk)

            # Q . K^T with the transpose absorbed into the MXU operand feed.
            s = jax.lax.dot_general(
                qh, kh, (((1,), (1,)), ((), ())),
                preferred_element_type=jnp.float32)
            s = jnp.where(mask, s, NEG_INF)

            # online softmax update (all f32 on the VPU/EUP)
            m_prev = m_scr[h]                                     # (tq, 1)
            m_next = jnp.maximum(m_prev, jnp.max(s, axis=-1, keepdims=True))
            alpha = jnp.exp(m_prev - m_next)
            p = jnp.exp(s - m_next)                               # (tq, tk)

            l_scr[h] = alpha * l_scr[h] + jnp.sum(p, axis=-1, keepdims=True)
            acc_scr[h] = alpha * acc_scr[h] + jnp.dot(
                p.astype(cdt), vh, preferred_element_type=jnp.float32)
            m_scr[h] = m_next

    if is_causal:
        # kv tiles strictly above the diagonal contribute nothing: skip them
        # (their DMA is also suppressed via the clamped index_maps).
        pl.when(ki * k_block <= qi * q_block + (q_block - 1))(_compute)
    else:
        _compute()

    @pl.when(ki == nk - 1)
    def _finalize():
        # Normalize with an EUP reciprocal, concat heads along features, then
        # ONE wide (tq, D) x (D, D) output-projection matmul + bias.
        inv_l = pl.reciprocal(l_scr[...], approx=True)            # (H, tq, 1)
        heads = acc_scr[...] * inv_l                              # (H, tq, dk)
        concat = jnp.concatenate(
            [heads[h] for h in range(num_heads)], axis=-1).astype(cdt)
        out = jnp.dot(concat, wo_ref[...], preferred_element_type=jnp.float32)
        out = out + bo_ref[...].astype(jnp.float32)
        o_ref[0] = out.astype(o_ref.dtype)


def _pick_block(seq_len, target):
    if seq_len <= target:
        return seq_len
    for cand in range(target, 127, -128):      # keep lane/mask tiles 128-aligned
        if seq_len % cand == 0:
            return cand
    return seq_len


# --------------------------------------------------------------------------
# Wrapper: fused-weight prep, hoisted projections, flash attention call.
# --------------------------------------------------------------------------
def multi_head_attention(q, k, v, padding_mask, params, *, num_heads,
                         is_causal=False, q_block=None, k_block=None,
                         compute_dtype=jnp.bfloat16):
    """q, k, v: (B, S, D); padding_mask: (B, Sk) bool/int; params = per-head stacks."""
    wq, wk, wv, wo, bo = params
    B, Sq, D = q.shape
    Sk = k.shape[1]
    assert D % num_heads == 0
    dk = D // num_heads
    HD = num_heads * dk
    scale = 1.0 / math.sqrt(dk)

    if q_block is None:
        q_block = _pick_block(Sq, 128)
    if k_block is None:
        k_block = _pick_block(Sk, 256)        # bigger kv tiles amortize per-step cost
    assert Sq % q_block == 0 and Sk % k_block == 0

    # Fuse per-head projection weights into full-width matrices; fold the
    # 1/sqrt(dk) softmax scale into Wq so the kernel never multiplies scores.
    wq_f = (jnp.transpose(wq, (1, 0, 2)).reshape(D, HD) * scale).astype(compute_dtype)
    wk_f = jnp.transpose(wk, (1, 0, 2)).reshape(D, HD).astype(compute_dtype)
    wv_f = jnp.transpose(wv, (1, 0, 2)).reshape(D, HD).astype(compute_dtype)
    wo_f = wo.reshape(HD, D).astype(compute_dtype)
    bo_f = bo.astype(jnp.float32)

    # Hoisted fused projections: one wide (B*S, D) x (D, H*dk) matmul each
    # (previously K/V were re-projected inside the kv loop of every q tile).
    qc = q.astype(compute_dtype)
    kc = k.astype(compute_dtype)
    vc = v.astype(compute_dtype)
    qp = _project(qc.reshape(B * Sq, D), wq_f, compute_dtype).reshape(B, Sq, HD)
    kp = _project(kc.reshape(B * Sk, D), wk_f, compute_dtype).reshape(B, Sk, HD)
    vp = _project(vc.reshape(B * Sk, D), wv_f, compute_dtype).reshape(B, Sk, HD)

    mask3 = padding_mask.astype(jnp.int32).reshape(B, 1, Sk)

    # Causal: clamp the kv block index for skipped above-diagonal tiles so the
    # pipeline re-uses the already-resident block and issues no new DMA.
    def kv_map(b, i, j):
        if is_causal:
            j = jnp.minimum(j, (i * q_block + q_block - 1) // k_block)
        return (b, j, 0)

    def mask_map(b, i, j):
        if is_causal:
            j = jnp.minimum(j, (i * q_block + q_block - 1) // k_block)
        return (b, 0, j)

    kernel = partial(mha_flash_kernel, num_heads=num_heads, head_dim=dk,
                     is_causal=is_causal, q_block=q_block, k_block=k_block)

    grid = (B, Sq // q_block, Sk // k_block)   # B * Sq/q_block >= 2 feeds both v7x TCs

    return pl.pallas_call(
        kernel,
        out_shape=jax.ShapeDtypeStruct((B, Sq, D), q.dtype),
        grid=grid,
        in_specs=[
            pl.BlockSpec((1, q_block, HD), lambda b, i, j: (b, i, 0)),  # Q proj
            pl.BlockSpec((1, k_block, HD), kv_map),                     # K proj
            pl.BlockSpec((1, k_block, HD), kv_map),                     # V proj
            pl.BlockSpec((1, 1, k_block), mask_map),                    # padding mask
            pl.BlockSpec((HD, D), lambda b, i, j: (0, 0)),              # W_out fused
            pl.BlockSpec((1, D), lambda b, i, j: (0, 0)),               # b_out
        ],
        out_specs=pl.BlockSpec((1, q_block, D), lambda b, i, j: (b, i, 0)),
        scratch_shapes=[
            pltpu.VMEM((num_heads, q_block, 1), jnp.float32),   # m (running max)
            pltpu.VMEM((num_heads, q_block, 1), jnp.float32),   # l (running denom)
            pltpu.VMEM((num_heads, q_block, dk), jnp.float32),  # acc (running numer)
        ],
        compiler_params=pltpu.CompilerParams(
            dimension_semantics=("parallel", "parallel", "arbitrary")),
    )(qp, kp, vp, mask3, wo_f, bo_f)


# --------------------------------------------------------------------------
# Pure-JAX reference mirroring the PyTorch module (f32, exact).
# --------------------------------------------------------------------------
def reference_mha(q, k, v, padding_mask, params, *, num_heads, is_causal=False):
    wq, wk, wv, wo, bo = params
    B, Sq, D = q.shape
    Sk = k.shape[1]
    dk = D // num_heads
    pad = padding_mask[:, None, :]  # (B, 1, Sk)
    outs = []
    for h in range(num_heads):
        qh = q @ wq[h]
        kh = k @ wk[h]
        vh = v @ wv[h]
        sim = jnp.einsum("bqd,bkd->bqk", qh, kh) / math.sqrt(dk)
        if is_causal:
            causal = jnp.tril(jnp.ones((Sq, Sk), dtype=bool))
            m = jnp.logical_and(pad, causal[None])
        else:
            m = jnp.broadcast_to(pad, (B, Sq, Sk))
        sim = jnp.where(m, sim, -jnp.inf)
        attn = jax.nn.softmax(sim, axis=-1)
        outs.append(jnp.einsum("bqk,bkd->bqd", attn, vh))
    out = jnp.zeros((B, Sq, D), jnp.float32)
    for h in range(num_heads):
        out = out + outs[h] @ wo[h]
    return out + bo


def init_params(key, model_dim, num_heads):
    dk = model_dim // num_heads
    ks = jax.random.split(key, 5)
    scale_in = 1.0 / math.sqrt(model_dim)
    scale_out = 1.0 / math.sqrt(dk * num_heads)
    wq = jax.random.uniform(ks[0], (num_heads, model_dim, dk), jnp.float32, -scale_in, scale_in)
    wk = jax.random.uniform(ks[1], (num_heads, model_dim, dk), jnp.float32, -scale_in, scale_in)
    wv = jax.random.uniform(ks[2], (num_heads, model_dim, dk), jnp.float32, -scale_in, scale_in)
    # PyTorch W_out: Linear(dk*H, D) with weight (D, dk*H); we store the
    # per-head transposed slices: wo[h] = W_out[:, h*dk:(h+1)*dk].T  -> (dk, D)
    wo = jax.random.uniform(ks[3], (num_heads, dk, model_dim), jnp.float32, -scale_out, scale_out)
    bo = jax.random.uniform(ks[4], (1, model_dim), jnp.float32, -scale_out, scale_out)
    return wq, wk, wv, wo, bo


if __name__ == "__main__":

    def run_case(B, Sq, Sk, D, H, is_causal, n_pad, seed,
                 compute_dtype=jnp.bfloat16, atol=5e-2, rtol=5e-2,
                 q_block=None, k_block=None):
        kq, kk, kv, kp = jax.random.split(jax.random.PRNGKey(seed), 4)
        q = jax.random.normal(kq, (B, Sq, D), jnp.float32)
        k = jax.random.normal(kk, (B, Sk, D), jnp.float32)
        v = jax.random.normal(kv, (B, Sk, D), jnp.float32)
        padding_mask = jnp.ones((B, Sk), dtype=bool)
        if n_pad:
            padding_mask = padding_mask.at[-1, -n_pad:].set(False)
        params = init_params(kp, D, H)

        out = multi_head_attention(q, k, v, padding_mask, params,
                                   num_heads=H, is_causal=is_causal,
                                   compute_dtype=compute_dtype,
                                   q_block=q_block, k_block=k_block)
        out = jax.block_until_ready(out)
        ref = reference_mha(q, k, v, padding_mask, params,
                            num_heads=H, is_causal=is_causal)
        assert out.shape == (B, Sq, D)
        assert jnp.allclose(out, ref, atol=atol, rtol=rtol), \
            f"mismatch vs reference: max abs err {jnp.max(jnp.abs(out - ref)):.3e}"

    key0 = jax.random.PRNGKey(0)  # deterministic seeds below

    # small shapes implied by the module spec (single q/kv tile); f32 compute
    # path checked at tight tolerance (only the approx reciprocal differs).
    run_case(B=2, Sq=8, Sk=8, D=32, H=4, is_causal=True, n_pad=2, seed=0,
             compute_dtype=jnp.float32, atol=2e-3, rtol=2e-3)
    run_case(B=2, Sq=8, Sk=8, D=32, H=4, is_causal=False, n_pad=2, seed=1,
             compute_dtype=jnp.float32, atol=2e-3, rtol=2e-3)
    # larger cases exercising the tiled online-softmax path in the default
    # bf16 compute mode (looser tolerance covers bf16 MXU operands).
    run_case(B=2, Sq=256, Sk=256, D=128, H=4, is_causal=True, n_pad=40, seed=2)
    # multiple kv tiles: non-causal online-softmax accumulation across tiles,
    # and causal tile-skipping + clamped (DMA-free) index maps.
    run_case(B=2, Sq=256, Sk=512, D=128, H=4, is_causal=False, n_pad=100, seed=3)
    run_case(B=2, Sq=512, Sk=512, D=128, H=4, is_causal=True, n_pad=64, seed=4,
             q_block=128, k_block=256)

    print("KERNEL_OK")
</pallas_src>

<mosaic_0001>
module attributes {stable_mosaic.version = 11 : i64} {
  func.func @_proj_kernel(%arg0: i32, %arg1: memref<16x32xf32, #tpu.memory_space<vmem>>, %arg2: memref<32x32xf32, #tpu.memory_space<vmem>>, %arg3: memref<16x32xf32, #tpu.memory_space<vmem>>) attributes {dimension_semantics = [#tpu.dimension_semantics<parallel>], iteration_bounds = array<i64: 1>, scalar_prefetch = 0 : i64, scratch_operands = 0 : i64, tpu.core_type = #tpu.core_type<tc>, window_params = [{transform_indices = @transform_0, window_bounds = array<i64: 16, 32>}, {pipeline_mode = #tpu.pipeline_mode<synchronous>, transform_indices = @transform_1, window_bounds = array<i64: 32, 32>}, {transform_indices = @transform_2, window_bounds = array<i64: 16, 32>}]} {
    %c0 = arith.constant 0 : index
    %c0_0 = arith.constant 0 : index
    %0 = vector.load %arg1[%c0, %c0_0] : memref<16x32xf32, #tpu.memory_space<vmem>>, vector<16x32xf32>
    %c0_1 = arith.constant 0 : index
    %c0_2 = arith.constant 0 : index
    %1 = vector.load %arg2[%c0_1, %c0_2] : memref<32x32xf32, #tpu.memory_space<vmem>>, vector<32x32xf32>
    %cst = arith.constant dense<0.000000e+00> : vector<16x32xf32>
    %2 = tpu.matmul %0, %1, %cst {dimension_numbers = #tpu.dot_dimension_numbers<[1], [0], [0], [1], [0, 0, 1, 1], [], []>} : vector<16x32xf32>, vector<32x32xf32>, vector<16x32xf32> -> vector<16x32xf32>
    %c0_3 = arith.constant 0 : index
    %c0_4 = arith.constant 0 : index
    %3 = vector.load %arg3[%c0_3, %c0_4] : memref<16x32xf32, #tpu.memory_space<vmem>>, vector<16x32xf32>
    tpu.vector_store %arg3[%c0_3, %c0_4], %2 {strides = array<i32>} : memref<16x32xf32, #tpu.memory_space<vmem>>, vector<16x32xf32>,
    return
  }
  func.func @transform_0(%arg0: i32) -> (i32, i32) {
    %c0_i32 = arith.constant 0 : i32
    %c0_i32_0 = arith.constant 0 : i32
    return %arg0, %c0_i32 : i32, i32
  }
  func.func @transform_1(%arg0: i32) -> (i32, i32) {
    %c0_i32 = arith.constant 0 : i32
    %c0_i32_0 = arith.constant 0 : i32
    %c0_i32_1 = arith.constant 0 : i32
    return %c0_i32, %c0_i32_0 : i32, i32
  }
  func.func @transform_2(%arg0: i32) -> (i32, i32) {
    %c0_i32 = arith.constant 0 : i32
    %c0_i32_0 = arith.constant 0 : i32
    return %arg0, %c0_i32 : i32, i32
  }
}

</mosaic_0001>

<bundles_post_ra>
// kernel: tpu_custom_call.1
= control target key start
LH: loop header
LB: loop body
LE: loop exit
PB: predicated region body
PF: predicated region fallthrough
CT: control target
= control target key end

     0   :  { %7 = vsyncpa [#allocation3], 0  ;;  %s280_s0 = inlined_call_operand.hbm [shape: f32[16,32], index: 0, kind: input, shape index: {}]   ;;  %s281_s1 = inlined_call_operand.hbm [shape: f32[32,32], index: 1, kind: input, shape index: {}]   ;;  %s282_s2 = inlined_call_operand.hbm [shape: f32[16,32], index: 2, kind: output, shape index: {}]  }
   0x1   :  { %8 = vsyncpa [#allocation6], 0 }
   0x2   :  { %9 = vsyncpa [#allocation4], 0  ;;  %s238_s9 = smov [#allocation2]  }
   0x3   :  { %s15_s10 = sshll.u32 %s238_s9, 4  ;;  %s16_s10 = int_to_ptr.vmem [resolvable:$true] %s15_s10 }
   0x4   :  { %s180_s11 = scalar_lea.vmem %s16_s10, 256  ;;  %p185_p1 = scmp.lt.s32.totalorder %s16_s10, %s16_s10 }
   0x5   :  { %p181_p0 = scmp.ne.s32.totalorder %s16_s10, %s180_s11  ;;  %p186_p2 = scmp.lt.s32.totalorder %s180_s11, %s180_s11 }
   0x7   :  { %p187_p3 = por %p186_p2, %p185_p1 }
   0x9   :  { %p188_p4 = pnand %p187_p3, %p181_p0 }
   0xb   :  { %191 = shalt.err (!%p188_p4)
}
   0xc   :  { %s239_s12 = smov 128   ;;  %s240_s13 = smov 8  }
   0xd   :  { %21 = dma.hbm_to_vmem [thread:$0]  %s280_s0, 256, %s16_s10, [#allocation3], %s239_s12, %s239_s12, %s240_s13  }
   0xe   :  { %s241_s16 = smov [#allocation5]  }
   0xf   :  { %s27_s17 = sshll.u32 %s241_s16, 4  ;;  %s28_s17 = int_to_ptr.vmem [resolvable:$true] %s27_s17 }
  0x10   :  { %s200_s18 = scalar_lea.vmem %s28_s17, 512  ;;  %p205_p6 = scmp.lt.s32.totalorder %s28_s17, %s28_s17 }
  0x11   :  { %p201_p5 = scmp.ne.s32.totalorder %s28_s17, %s200_s18  ;;  %p206_p7 = scmp.lt.s32.totalorder %s200_s18, %s200_s18 }
  0x13   :  { %p207_p8 = por %p206_p7, %p205_p6 }
  0x15   :  { %p208_p9 = pnand %p207_p8, %p201_p5 }
  0x17   :  { %211 = shalt.err (!%p208_p9)
}
  0x18   :  { %33 = dma.hbm_to_vmem [thread:$0]  %s281_s1, 512, %s28_s17, [#allocation6], %s239_s12, %s239_s12, %s240_s13  }
  0x19   :  { %232 = dma.done.wait [#allocation3], 256  }
  0x1a   :  { %233 = vsyncadd [#allocation3], 4294967040 }
  0x1b   :  { %234 = dma.done.wait [#allocation6], 512  }
  0x1c   :  { %235 = vsyncadd [#allocation6], 4294966784  ;;  %vm46_vm0 = vcmask 261120   ;;  %v45_v0 = vld [vmem:[#allocation5 + $0x18] sm:$0xff]  ;;  %v44_v1 = vld [vmem:[#allocation5 + $0x10] sm:$0xff]  ;;  %s242_s0 = smov [#allocation7]  }
  0x1d   :  { %156 = vmatprep.subr.mxu0 %v45_v0  ;;  %v40_v2 = vld [vmem:[#allocation2] sm:$0xff]  ;;  %v43_v3 = vld [vmem:[#allocation5 + $0x8] sm:$0xff]  ;;  %v42_v4 = vld [vmem:[#allocation5] sm:$0xff]  ;;  %s135_s1 = sshll.u32 %s242_s0, 4  ;;  %s136_s1 = int_to_ptr.vmem [resolvable:$true] %s135_s1 }
  0x1e   :  { %157 = vmatpush3.msra.mxu0 %v45_v0  ;;  %164 = vmatprep.mubr.msk.f32.mxu0 %vm46_vm0, %v40_v2  ;;  %v41_v5 = vld [vmem:[#allocation2 + $0x8] sm:$0xff]  ;;  %s212_s21 = scalar_lea.vmem %s136_s1, 256  ;;  %p217_p11 = scmp.lt.s32.totalorder %s136_s1, %s136_s1 }
  0x1f   :  { %158 = vmatprep.subr.mxu0 %v44_v1  ;;  %p213_p10 = scmp.ne.s32.totalorder %s136_s1, %s212_s21  ;;  %p218_p12 = scmp.lt.s32.totalorder %s212_s21, %s212_s21 }
  0x20   :  { %159 = vmatpush3.msra.mxu0 %v44_v1 }
  0x21   :  { %160 = vmatprep.subr.mxu0 %v43_v3  ;;  %p219_p13 = por %p218_p12, %p217_p11 }
  0x22   :  { %161 = vmatpush3.msra.mxu0 %v43_v3 }
  0x23   :  { %162 = vmatprep.subr.mxu0 %v42_v4  ;;  %p220_p0 = pnand %p219_p13, %p213_p10 }
  0x24   :  { %163 = vmatpush3.msra.mxu0 %v42_v4 }
  0x25   :  { %165 = vmatmul.mubr.msk.f32.vlgmr.msra.gmra.mxu0 %vm46_vm0, %v41_v5 }
  0xe5   :  { %v166_v6 = vpop.f32.mrf.mxu0 }
  0xe6   :  { %129 = vst.msk [vmem:[#allocation7 + $0x8] sm:$0xff] %vm46_vm0, %v166_v6 }
  0xe7   :  { %v119_v7 = vpop.f32.mrf.mxu0 }
  0xe8   :  { %128 = vst.msk [vmem:[#allocation7] sm:$0xff] %vm46_vm0, %v119_v7 }
  0xe9   :  { %223 = shalt.err (!%p220_p0)
}
  0xea   :  { %141 = dma.vmem_to_hbm [thread:$0]  %s136_s1, 256, %s282_s2, [#allocation4], %s239_s12, %s239_s12, %s240_s13  }
  0xeb   :  { %236 = dma.done.wait [#allocation4], 256  }
  0xec   :  { %237 = vsyncadd [#allocation4], 4294967040 }
  0xed   :  { %145 = vsyncpa [#allocation3], 1 }
  0xee   :  { %146 = vsyncpa [#allocation6], 1 }
  0xef   :  { %147 = vsyncpa [#allocation4], 1 }

</bundles_post_ra>
